<compile_context>
chip_gen: v6e
topology: v6e:2x2x1
jax: 0.10.0
libtpu: 0.0.40
codegen_flags: <defaults>
</compile_context>

<pallas_src>
import functools

import jax
import jax.numpy as jnp
from jax.experimental import pallas as pl
from jax.experimental.pallas import tpu as pltpu

_LANE = 128
_SQRT_2_OVER_PI = 0.7978845608028654


def _round_up(a, m):
    return -(-a // m) * m


def _gelu_tanh(x):
    # tanh-approximate GELU (== torch.nn.GELU(approximate='tanh')).
    return 0.5 * x * (1.0 + jnp.tanh(_SQRT_2_OVER_PI * (x + 0.044715 * (x * x * x))))


def _vmem_capacity_bytes():
    try:
        return int(pltpu.get_tpu_info().vmem_capacity_bytes)
    except Exception:
        return 64 << 20            # conservative fallback (v7x per-TC VMEM)


def _mlp_kernel(x_ref, w1_ref, b1_ref, w2_ref, b2_ref, o_ref, *, matmul_dtype):
    # x_ref/o_ref: (1, C, TS); w*_ref: (C, C) in matmul_dtype; b*_ref: (C, 1) f32.
    x = x_ref[0].astype(matmul_dtype)                                   # (C, TS)
    h = jnp.dot(w1_ref[...], x, preferred_element_type=jnp.float32)     # f32 acc
    h = _gelu_tanh(h + b1_ref[...])
    y = jnp.dot(w2_ref[...], h.astype(matmul_dtype),
                preferred_element_type=jnp.float32)
    o_ref[0] = (y + b2_ref[...]).astype(o_ref.dtype)


def mlp_block(x, w1, b1, w2, b2, *, spatial_tile=None, use_bf16_matmul=True):
    """MlpBlock forward.

    x: (B, C, H, W) NCHW with C == mlp_dim; w1/w2: (C, C) torch-Linear weights
    (out_features, in_features); b1/b2: (C,).  Output dtype == x dtype; feed
    bf16 activations end-to-end from the producer for the full HBM-bandwidth
    win (this kernel is memory-bound at realistic C).
    """
    B, C, H, W = x.shape
    if w1.shape != (C, C) or w2.shape != (C, C):
        raise ValueError("mlp_dim must equal the channel dimension C")

    HW = H * W
    x3 = x.reshape(B, C, HW)            # contiguous (free) reshape, stays NCHW

    matmul_dtype = jnp.bfloat16 if use_bf16_matmul else jnp.float32
    # Narrow only the MXU inputs; accumulation stays f32 (preferred_element_type).
    w1m = w1.astype(matmul_dtype)
    w2m = w2.astype(matmul_dtype)
    b1c = b1.reshape(C, 1).astype(jnp.float32)
    b2c = b2.reshape(C, 1).astype(jnp.float32)

    # ---------------- generation-aware VMEM budget & spatial tile ------------
    x_isz = jnp.dtype(x.dtype).itemsize
    w_isz = jnp.dtype(matmul_dtype).itemsize
    vmem_budget = max(32 << 20, (_vmem_capacity_bytes() * 3) // 4)  # 48 / 96 MiB

    # Resident weight/bias bytes; budget for double-buffering so the fallback
    # path (no Buffered(1)) is also safe.
    weight_bytes = 2 * 2 * C * C * w_isz
    bias_bytes = 2 * 2 * _round_up(C, 8) * _LANE * 4
    # Per spatial column: double-buffered in/out tiles + ~4 live f32
    # intermediates (x-cast, h, gelu temps, y) inside the body.
    per_col = 2 * 2 * C * x_isz + 4 * C * 4
    avail = vmem_budget - weight_bytes - bias_bytes - (4 << 20)      # headroom
    cap = max(_LANE, (avail // per_col // _LANE) * _LANE)
    if spatial_tile is not None:        # honor caller override only if given
        cap = min(cap, max(_LANE, (spatial_tile // _LANE) * _LANE))

    ts = min(cap, _round_up(HW, _LANE))
    # v7x has 2 TensorCores: make sure a B == 1 launch still has >= 2 grid steps.
    if B == 1 and HW > _LANE and pl.cdiv(HW, ts) == 1:
        ts = _round_up(pl.cdiv(HW, 2), _LANE)
    grid = (B, pl.cdiv(HW, ts))         # ragged last spatial block is masked

    kernel = functools.partial(_mlp_kernel, matmul_dtype=matmul_dtype)
    out_shape = jax.ShapeDtypeStruct((B, C, HW), x.dtype)
    compiler_params = pltpu.CompilerParams(
        dimension_semantics=("parallel", "parallel"),
        vmem_limit_bytes=int(vmem_budget),
    )

    def build(single_buffer_consts):
        const_kw = (dict(pipeline_mode=pl.Buffered(1))
                    if single_buffer_consts else {})
        return pl.pallas_call(
            kernel,
            out_shape=out_shape,
            grid_spec=pltpu.PrefetchScalarGridSpec(
                num_scalar_prefetch=0,
                grid=grid,
                in_specs=[
                    pl.BlockSpec((1, C, ts), lambda b, s: (b, 0, s)),        # x
                    pl.BlockSpec((C, C), lambda b, s: (0, 0), **const_kw),   # W1
                    pl.BlockSpec((C, 1), lambda b, s: (0, 0), **const_kw),   # b1
                    pl.BlockSpec((C, C), lambda b, s: (0, 0), **const_kw),   # W2
                    pl.BlockSpec((C, 1), lambda b, s: (0, 0), **const_kw),   # b2
                ],
                out_specs=pl.BlockSpec((1, C, ts), lambda b, s: (b, 0, s)),
            ),
            compiler_params=compiler_params,
        )

    try:
        # Constant-index_map operands single-buffered: frees VMEM for a larger
        # lane-dense spatial tile (matters most on v7x's 64 MiB VMEM).
        out = build(True)(x3, w1m, b1c, w2m, b2c)
    except Exception:
        # Fallback for JAX versions without BlockSpec(pipeline_mode=...).
        out = build(False)(x3, w1m, b1c, w2m, b2c)

    return out.reshape(B, C, H, W)


def _reference(x, w1, b1, w2, b2):
    xh = jnp.transpose(x, (0, 2, 3, 1)).astype(jnp.float32)
    h = jnp.einsum("bhwi,oi->bhwo", xh, w1.astype(jnp.float32),
                   precision=jax.lax.Precision.HIGHEST) + b1
    h = _gelu_tanh(h)
    y = jnp.einsum("bhwi,oi->bhwo", h, w2.astype(jnp.float32),
                   precision=jax.lax.Precision.HIGHEST) + b2
    return jnp.transpose(y, (0, 3, 1, 2)).astype(x.dtype)


if __name__ == "__main__":
    key = jax.random.PRNGKey(0)
    k_x, k_w1, k_b1, k_w2, k_b2 = jax.random.split(key, 5)

    # x: (B, C, H, W); the module requires mlp_dim == C.
    B, C, H, W = 2, 32, 16, 16
    x = jax.random.normal(k_x, (B, C, H, W), dtype=jnp.float32)
    scale = 1.0 / float(C) ** 0.5
    w1 = jax.random.normal(k_w1, (C, C), dtype=jnp.float32) * scale
    b1 = jax.random.normal(k_b1, (C,), dtype=jnp.float32) * 0.1
    w2 = jax.random.normal(k_w2, (C, C), dtype=jnp.float32) * scale
    b2 = jax.random.normal(k_b2, (C,), dtype=jnp.float32) * 0.1

    ref = _reference(x, w1, b1, w2, b2)

    # f32 MXU path: tight tolerance.
    out_f32 = jax.block_until_ready(
        mlp_block(x, w1, b1, w2, b2, use_bf16_matmul=False))
    assert out_f32.shape == (B, C, H, W)
    assert jnp.allclose(out_f32, ref, atol=1e-4, rtol=1e-4), float(
        jnp.max(jnp.abs(out_f32 - ref)))

    # Default fast path (bf16 MXU inputs, f32 accumulation): looser tolerance.
    out_bf16 = jax.block_until_ready(mlp_block(x, w1, b1, w2, b2))
    assert out_bf16.shape == (B, C, H, W)
    assert jnp.allclose(out_bf16, ref, atol=5e-2, rtol=5e-2), float(
        jnp.max(jnp.abs(out_bf16 - ref)))

    print("KERNEL_OK")
</pallas_src>

<mosaic_0001>
module attributes {stable_mosaic.version = 11 : i64} {
  func.func @_mlp_kernel(%arg0: i32, %arg1: i32, %arg2: memref<1x32x256xf32, #tpu.memory_space<vmem>>, %arg3: memref<32x32xf32, #tpu.memory_space<vmem>>, %arg4: memref<32x1xf32, #tpu.memory_space<vmem>>, %arg5: memref<32x32xf32, #tpu.memory_space<vmem>>, %arg6: memref<32x1xf32, #tpu.memory_space<vmem>>, %arg7: memref<1x32x256xf32, #tpu.memory_space<vmem>>) attributes {dimension_semantics = [#tpu.dimension_semantics<parallel>, #tpu.dimension_semantics<parallel>], iteration_bounds = array<i64: 2, 1>, scalar_prefetch = 0 : i64, scratch_operands = 0 : i64, tpu.core_type = #tpu.core_type<tc>, window_params = [{transform_indices = @transform_0, window_bounds = array<i64: 1, 32, 256>}, {pipeline_mode = #tpu.pipeline_mode<synchronous>, transform_indices = @transform_1, window_bounds = array<i64: 32, 32>}, {pipeline_mode = #tpu.pipeline_mode<synchronous>, transform_indices = @transform_2, window_bounds = array<i64: 32, 1>}, {pipeline_mode = #tpu.pipeline_mode<synchronous>, transform_indices = @transform_3, window_bounds = array<i64: 32, 32>}, {pipeline_mode = #tpu.pipeline_mode<synchronous>, transform_indices = @transform_4, window_bounds = array<i64: 32, 1>}, {transform_indices = @transform_5, window_bounds = array<i64: 1, 32, 256>}]} {
    %c0 = arith.constant 0 : index
    %c0_0 = arith.constant 0 : index
    %c0_1 = arith.constant 0 : index
    %0 = vector.load %arg2[%c0, %c0_0, %c0_1] : memref<1x32x256xf32, #tpu.memory_space<vmem>>, vector<1x32x256xf32>
    %1 = vector.shape_cast %0 : vector<1x32x256xf32> to vector<32x256xf32>
    %c0_2 = arith.constant 0 : index
    %c0_3 = arith.constant 0 : index
    %2 = vector.load %arg3[%c0_2, %c0_3] : memref<32x32xf32, #tpu.memory_space<vmem>>, vector<32x32xf32>
    %cst = arith.constant dense<0.000000e+00> : vector<32x256xf32>
    %3 = tpu.matmul %2, %1, %cst {dimension_numbers = #tpu.dot_dimension_numbers<[1], [0], [0], [1], [0, 0, 1, 1], [], []>} : vector<32x32xf32>, vector<32x256xf32>, vector<32x256xf32> -> vector<32x256xf32>
    %c0_4 = arith.constant 0 : index
    %c0_5 = arith.constant 0 : index
    %4 = vector.load %arg4[%c0_4, %c0_5] : memref<32x1xf32, #tpu.memory_space<vmem>>, vector<32x1xf32>
    %5 = vector.broadcast %4 : vector<32x1xf32> to vector<32x256xf32>
    %6 = arith.addf %3, %5 : vector<32x256xf32>
    %cst_6 = arith.constant 5.000000e-01 : f32
    %7 = vector.broadcast %cst_6 : f32 to vector<32x256xf32>
    %8 = arith.mulf %7, %6 : vector<32x256xf32>
    %9 = arith.mulf %6, %6 : vector<32x256xf32>
    %10 = arith.mulf %9, %6 : vector<32x256xf32>
    %cst_7 = arith.constant 4.471500e-02 : f32
    %11 = vector.broadcast %cst_7 : f32 to vector<32x256xf32>
    %12 = arith.mulf %11, %10 : vector<32x256xf32>
    %13 = arith.addf %6, %12 : vector<32x256xf32>
    %cst_8 = arith.constant 0.797884583 : f32
    %14 = vector.broadcast %cst_8 : f32 to vector<32x256xf32>
    %15 = arith.mulf %14, %13 : vector<32x256xf32>
    %16 = math.tanh %15 : vector<32x256xf32>
    %cst_9 = arith.constant 1.000000e+00 : f32
    %17 = vector.broadcast %cst_9 : f32 to vector<32x256xf32>
    %18 = arith.addf %17, %16 : vector<32x256xf32>
    %19 = arith.mulf %8, %18 : vector<32x256xf32>
    %c0_10 = arith.constant 0 : index
    %c0_11 = arith.constant 0 : index
    %20 = vector.load %arg5[%c0_10, %c0_11] : memref<32x32xf32, #tpu.memory_space<vmem>>, vector<32x32xf32>
    %cst_12 = arith.constant dense<0.000000e+00> : vector<32x256xf32>
    %21 = tpu.matmul %20, %19, %cst_12 {dimension_numbers = #tpu.dot_dimension_numbers<[1], [0], [0], [1], [0, 0, 1, 1], [], []>} : vector<32x32xf32>, vector<32x256xf32>, vector<32x256xf32> -> vector<32x256xf32>
    %c0_13 = arith.constant 0 : index
    %c0_14 = arith.constant 0 : index
    %22 = vector.load %arg6[%c0_13, %c0_14] : memref<32x1xf32, #tpu.memory_space<vmem>>, vector<32x1xf32>
    %23 = vector.broadcast %22 : vector<32x1xf32> to vector<32x256xf32>
    %24 = arith.addf %21, %23 : vector<32x256xf32>
    %c0_15 = arith.constant 0 : index
    %c0_16 = arith.constant 0 : index
    %c0_17 = arith.constant 0 : index
    %25 = vector.load %arg7[%c0_15, %c0_16, %c0_17] : memref<1x32x256xf32, #tpu.memory_space<vmem>>, vector<1x32x256xf32>
    %26 = vector.shape_cast %25 : vector<1x32x256xf32> to vector<32x256xf32>
    %27 = vector.shape_cast %24 : vector<32x256xf32> to vector<1x32x256xf32>
    tpu.vector_store %arg7[%c0_15, %c0_16, %c0_17], %27 {strides = array<i32>} : memref<1x32x256xf32, #tpu.memory_space<vmem>>, vector<1x32x256xf32>,
    return
  }
  func.func @transform_0(%arg0: i32, %arg1: i32) -> (i32, i32, i32) {
    %c0_i32 = arith.constant 0 : i32
    %c0_i32_0 = arith.constant 0 : i32
    return %arg0, %c0_i32, %arg1 : i32, i32, i32
  }
  func.func @transform_1(%arg0: i32, %arg1: i32) -> (i32, i32) {
    %c0_i32 = arith.constant 0 : i32
    %c0_i32_0 = arith.constant 0 : i32
    %c0_i32_1 = arith.constant 0 : i32
    return %c0_i32, %c0_i32_0 : i32, i32
  }
  func.func @transform_2(%arg0: i32, %arg1: i32) -> (i32, i32) {
    %c0_i32 = arith.constant 0 : i32
    %c0_i32_0 = arith.constant 0 : i32
    %c0_i32_1 = arith.constant 0 : i32
    return %c0_i32, %c0_i32_0 : i32, i32
  }
  func.func @transform_3(%arg0: i32, %arg1: i32) -> (i32, i32) {
    %c0_i32 = arith.constant 0 : i32
    %c0_i32_0 = arith.constant 0 : i32
    %c0_i32_1 = arith.constant 0 : i32
    return %c0_i32, %c0_i32_0 : i32, i32
  }
  func.func @transform_4(%arg0: i32, %arg1: i32) -> (i32, i32) {
    %c0_i32 = arith.constant 0 : i32
    %c0_i32_0 = arith.constant 0 : i32
    %c0_i32_1 = arith.constant 0 : i32
    return %c0_i32, %c0_i32_0 : i32, i32
  }
  func.func @transform_5(%arg0: i32, %arg1: i32) -> (i32, i32, i32) {
    %c0_i32 = arith.constant 0 : i32
    %c0_i32_0 = arith.constant 0 : i32
    return %arg0, %c0_i32, %arg1 : i32, i32, i32
  }
}

module attributes {stable_mosaic.version = 11 : i64} {
  func.func @_mlp_kernel(%arg0: i32, %arg1: i32, %arg2: memref<1x32x256xf32, #tpu.memory_space<vmem>>, %arg3: memref<32x32xf32, #tpu.memory_space<vmem>>, %arg4: memref<32x1xf32, #tpu.memory_space<vmem>>, %arg5: memref<32x32xf32, #tpu.memory_space<vmem>>, %arg6: memref<32x1xf32, #tpu.memory_space<vmem>>, %arg7: memref<1x32x256xf32, #tpu.memory_space<vmem>>) attributes {dimension_semantics = [#tpu.dimension_semantics<parallel>, #tpu.dimension_semantics<parallel>], iteration_bounds = array<i64: 2, 1>, scalar_prefetch = 0 : i64, scratch_operands = 0 : i64, tpu.core_type = #tpu.core_type<tc>, window_params = [{transform_indices = @transform_0, window_bounds = array<i64: 1, 32, 256>}, {pipeline_mode = #tpu.pipeline_mode<synchronous>, transform_indices = @transform_1, window_bounds = array<i64: 32, 32>}, {pipeline_mode = #tpu.pipeline_mode<synchronous>, transform_indices = @transform_2, window_bounds = array<i64: 32, 1>}, {pipeline_mode = #tpu.pipeline_mode<synchronous>, transform_indices = @transform_3, window_bounds = array<i64: 32, 32>}, {pipeline_mode = #tpu.pipeline_mode<synchronous>, transform_indices = @transform_4, window_bounds = array<i64: 32, 1>}, {transform_indices = @transform_5, window_bounds = array<i64: 1, 32, 256>}]} {
    %c0 = arith.constant 0 : index
    %c0_0 = arith.constant 0 : index
    %c0_1 = arith.constant 0 : index
    %0 = vector.load %arg2[%c0, %c0_0, %c0_1] : memref<1x32x256xf32, #tpu.memory_space<vmem>>, vector<1x32x256xf32>
    %1 = vector.shape_cast %0 : vector<1x32x256xf32> to vector<32x256xf32>
    %c0_2 = arith.constant 0 : index
    %c0_3 = arith.constant 0 : index
    %2 = vector.load %arg3[%c0_2, %c0_3] : memref<32x32xf32, #tpu.memory_space<vmem>>, vector<32x32xf32>
    %cst = arith.constant dense<0.000000e+00> : vector<32x256xf32>
    %3 = tpu.matmul %2, %1, %cst {dimension_numbers = #tpu.dot_dimension_numbers<[1], [0], [0], [1], [0, 0, 1, 1], [], []>} : vector<32x32xf32>, vector<32x256xf32>, vector<32x256xf32> -> vector<32x256xf32>
    %c0_4 = arith.constant 0 : index
    %c0_5 = arith.constant 0 : index
    %4 = vector.load %arg4[%c0_4, %c0_5] : memref<32x1xf32, #tpu.memory_space<vmem>>, vector<32x1xf32>
    %5 = vector.broadcast %4 : vector<32x1xf32> to vector<32x256xf32>
    %6 = arith.addf %3, %5 : vector<32x256xf32>
    %cst_6 = arith.constant 5.000000e-01 : f32
    %7 = vector.broadcast %cst_6 : f32 to vector<32x256xf32>
    %8 = arith.mulf %7, %6 : vector<32x256xf32>
    %9 = arith.mulf %6, %6 : vector<32x256xf32>
    %10 = arith.mulf %9, %6 : vector<32x256xf32>
    %cst_7 = arith.constant 4.471500e-02 : f32
    %11 = vector.broadcast %cst_7 : f32 to vector<32x256xf32>
    %12 = arith.mulf %11, %10 : vector<32x256xf32>
    %13 = arith.addf %6, %12 : vector<32x256xf32>
    %cst_8 = arith.constant 0.797884583 : f32
    %14 = vector.broadcast %cst_8 : f32 to vector<32x256xf32>
    %15 = arith.mulf %14, %13 : vector<32x256xf32>
    %16 = math.tanh %15 : vector<32x256xf32>
    %cst_9 = arith.constant 1.000000e+00 : f32
    %17 = vector.broadcast %cst_9 : f32 to vector<32x256xf32>
    %18 = arith.addf %17, %16 : vector<32x256xf32>
    %19 = arith.mulf %8, %18 : vector<32x256xf32>
    %c0_10 = arith.constant 0 : index
    %c0_11 = arith.constant 0 : index
    %20 = vector.load %arg5[%c0_10, %c0_11] : memref<32x32xf32, #tpu.memory_space<vmem>>, vector<32x32xf32>
    %cst_12 = arith.constant dense<0.000000e+00> : vector<32x256xf32>
    %21 = tpu.matmul %20, %19, %cst_12 {dimension_numbers = #tpu.dot_dimension_numbers<[1], [0], [0], [1], [0, 0, 1, 1], [], []>} : vector<32x32xf32>, vector<32x256xf32>, vector<32x256xf32> -> vector<32x256xf32>
    %c0_13 = arith.constant 0 : index
    %c0_14 = arith.constant 0 : index
    %22 = vector.load %arg6[%c0_13, %c0_14] : memref<32x1xf32, #tpu.memory_space<vmem>>, vector<32x1xf32>
    %23 = vector.broadcast %22 : vector<32x1xf32> to vector<32x256xf32>
    %24 = arith.addf %21, %23 : vector<32x256xf32>
    %c0_15 = arith.constant 0 : index
    %c0_16 = arith.constant 0 : index
    %c0_17 = arith.constant 0 : index
    %25 = vector.load %arg7[%c0_15, %c0_16, %c0_17] : memref<1x32x256xf32, #tpu.memory_space<vmem>>, vector<1x32x256xf32>
    %26 = vector.shape_cast %25 : vector<1x32x256xf32> to vector<32x256xf32>
    %27 = vector.shape_cast %24 : vector<32x256xf32> to vector<1x32x256xf32>
    tpu.vector_store %arg7[%c0_15, %c0_16, %c0_17], %27 {strides = array<i32>} : memref<1x32x256xf32, #tpu.memory_space<vmem>>, vector<1x32x256xf32>,
    return
  }
  func.func @transform_0(%arg0: i32, %arg1: i32) -> (i32, i32, i32) {
    %c0_i32 = arith.constant 0 : i32
    %c0_i32_0 = arith.constant 0 : i32
    return %arg0, %c0_i32, %arg1 : i32, i32, i32
  }
  func.func @transform_1(%arg0: i32, %arg1: i32) -> (i32, i32) {
    %c0_i32 = arith.constant 0 : i32
    %c0_i32_0 = arith.constant 0 : i32
    %c0_i32_1 = arith.constant 0 : i32
    return %c0_i32, %c0_i32_0 : i32, i32
  }
  func.func @transform_2(%arg0: i32, %arg1: i32) -> (i32, i32) {
    %c0_i32 = arith.constant 0 : i32
    %c0_i32_0 = arith.constant 0 : i32
    %c0_i32_1 = arith.constant 0 : i32
    return %c0_i32, %c0_i32_0 : i32, i32
  }
  func.func @transform_3(%arg0: i32, %arg1: i32) -> (i32, i32) {
    %c0_i32 = arith.constant 0 : i32
    %c0_i32_0 = arith.constant 0 : i32
    %c0_i32_1 = arith.constant 0 : i32
    return %c0_i32, %c0_i32_0 : i32, i32
  }
  func.func @transform_4(%arg0: i32, %arg1: i32) -> (i32, i32) {
    %c0_i32 = arith.constant 0 : i32
    %c0_i32_0 = arith.constant 0 : i32
    %c0_i32_1 = arith.constant 0 : i32
    return %c0_i32, %c0_i32_0 : i32, i32
  }
  func.func @transform_5(%arg0: i32, %arg1: i32) -> (i32, i32, i32) {
    %c0_i32 = arith.constant 0 : i32
    %c0_i32_0 = arith.constant 0 : i32
    return %arg0, %c0_i32, %arg1 : i32, i32, i32
  }
}

</mosaic_0001>

<bundles_post_ra>
// kernel: tpu_custom_call.1
= control target key start
LH: loop header
LB: loop body
LE: loop exit
PB: predicated region body
PF: predicated region fallthrough
CT: control target
= control target key end

     0   :  { %10 = vsyncpa [#allocation3], 0  ;;  %s1221_s0 = inlined_call_operand.hbm [shape: f32[2,32,256], index: 0, kind: input, shape index: {}]   ;;  %s1222_s1 = inlined_call_operand.vmem [shape: f32[32,32], index: 1, kind: input, shape index: {}]   ;;  %s1223_s2 = inlined_call_operand.vmem [shape: f32[32,1], index: 2, kind: input, shape index: {}]   ;;  %s1224_s3 = inlined_call_operand.vmem [shape: f32[32,32], index: 3, kind: input, shape index: {}]   ;;  %s1225_s4 = inlined_call_operand.vmem [shape: f32[32,1], index: 4, kind: input, shape index: {}]   ;;  %s1226_s5 = inlined_call_operand.hbm [shape: f32[2,32,256], index: 5, kind: output, shape index: {}]  }
   0x1   :  { %12 = vsyncpa [#allocation3 + $0x1], 0 }
   0x2   :  { %13 = vsyncpa [#allocation4], 0 }
   0x3   :  { %15 = vsyncpa [#allocation4 + $0x1], 0  ;;  %s972_s18 = smov 0   ;;  %s974_s19 = smov 0  }
   0x4   :  { %s976_s20 = smov 0   ;;  %s978_s21 = smov 0  }
   0x5   :  { %s980_s22 = smov 0   ;;  %s982_s23 = smov 0  }
   0x6 LB: > { %s713_s24 = sadd.s32 4294967295, %s932_s23   ;;  %s714_s25 = sadd.s32 4294967294, %s932_s23   ;;  %s932_s23 = sphi %s982_s23, %s21_s23   ;;  %s928_s22 = sphi %s980_s22, %s1237_s22   ;;  %s924_s21 = sphi %s978_s21, %s1236_s21   ;;  %s920_s20 = sphi %s976_s20, %s1235_s20   ;;  %s916_s19 = sphi %s974_s19, %s1234_s19   ;;  %s912_s18 = sphi %s972_s18, %s1233_s18  }
   0x7   : > { %s33_s26 = sadd.s32 1, %s928_s22  ;;  %s42_s27 = sadd.s32 1, %s920_s20 }
   0x8   : > { %p35_p0 = scmp.ge.s32.totalorder %s33_s26, 2  ;;  %p49_p1 = scmp.ne.s32.totalorder %s920_s20, %s916_s19 }
   0x9   : > { %p50_p2 = scmp.eq.s32.totalorder %s932_s23, 0  ;;  %p55_p3 = scmp.ne.s32.totalorder %s916_s19, %s912_s18 }
   0xa   : > { %s1239_s26 = smov (%p35_p0, %s33_s26), 0  ;;  %p56_p5 = scmp.eq.s32.totalorder %s713_s24, 0 }
   0xb   : > { %p1013_p4 = por %p50_p2, %p49_p1  ;;  %s37_s29 = ssub.s32 %s928_s22, %s1239_s26 }
   0xc   : > { %p165_p6 = scmp.eq.s32.totalorder %s713_s24, 1  ;;  %p40_p7 = scmp.eq.s32.totalorder %s37_s29, 0 }
   0xd   : > { %p1019_p8 = por %p56_p5, %p55_p3  ;;  %p171_p10 = scmp.eq.s32.totalorder %s714_s25, 1 }
   0xe   : > { %p1023_p9 = por %p165_p6, %p49_p1  ;;  %p750_p13 = scmp.lt.s32.totalorder %s932_s23, 2 }
   0xf   : > { %s1028_s7 = scalar_select %p40_p7, %s920_s20, %s42_s27  }
  0x10   : > { %p1030_p11 = por %p171_p10, %p55_p3  ;;  %s203_s9 = sand.u32 1, %s920_s20  }
  0x11   : > { %s717_s10 = sshll.u32 %s203_s9, 6  ;;  %s736_s11 = sshll.u32 %s928_s22, 10 }
  0x12   : > { %s215_s14 = scalar_lea.hbm %s1221_s0, %s736_s11  ;;  %s207_s15 = scalar_lea.vmem [#allocation2], %s717_s10 }
  0x13   : > { %s216_s16 = sshll.u32 %s207_s15, 4  ;;  %p1043_p0 = pnand %p750_p13, %p1013_p4  ;;  %s217_s16 = int_to_ptr.vmem [resolvable:$true] %s216_s16 }
  0x14   : > { %p720_p1 = scmp.ge.s32.totalorder %s932_s23, 1  ;;  %s204_s24 = scalar_lea.sflag [#allocation3], %s203_s9 }
  0x15   : > { %p826_p2 = pneg %p1043_p0  ;;  %s837_s25 = scalar_lea.vmem %s217_s16, 1024 }
  0x16   : > { %p838_p3 = scmp.ne.s32.totalorder %s217_s16, %s837_s25  ;;  %s934_s27 = smov [#allocation2]  }
  0x17   : > { %s842_s29 = sshll.u32 %s934_s27, 4  ;;  %s843_s29 = int_to_ptr.vmem [resolvable:$false] %s842_s29 }
  0x18   : > { %p840_p5 = pnand %p838_p3, %p826_p2  ;;  %s844_s10 = scalar_lea.vmem %s843_s29, 2048 }
  0x19   : > { %p845_p7 = scmp.lt.s32.totalorder %s217_s16, %s843_s29  ;;  %p846_p10 = scmp.lt.s32.totalorder %s844_s10, %s837_s25 }
  0x1a   : > { %p841_p6 = pneg %p840_p5 }
  0x1b   : > { %p847_p12 = por %p846_p10, %p845_p7 }
  0x1d   : > { %p848_p4 = pnand %p847_p12, %p841_p6 }
  0x1f   : > { %851 = shalt.err (!%p848_p4)
}
  0x20   : > { %s935_s28 = smov 256   ;;  %s936_s9 = smov 16  }
  0x21   : > { %745 = dma.hbm_to_vmem [thread:$0]  (!%p1043_p0), %s215_s14, 1024, %s217_s16, %s204_s24, %s935_s28, %s935_s28, %s936_s9  }
  0x22   : > { %p224_p13 = scmp.lt.s32.totalorder %s932_s23, 3 }
  0x24   : > { %p225_p2 = pnand %p720_p1, %p224_p13 }
  0x25   : > { %s1056_s11 = sand.u32 (!%p225_p2), 1, %s916_s19  }
  0x26   : > { %228 = sbr.rel (%p225_p2) target bundleno = 523 (0x20b), region = 40  ;;  %s721_s12 = sshll.u32 (!%p225_p2), %s1056_s11, 6 }
  0x27   : > { %s231_s13 = scalar_lea.sflag (!%p225_p2), [#allocation3], %s1056_s11  ;;  %s234_s15 = scalar_lea.vmem (!%p225_p2), [#allocation2], %s721_s12 }
  0x2b   : > { %903 = dma.done.wait (%p1019_p8), %s231_s13, 1024  }
  0x2c   : > { %905 = vsyncadd (%p1019_p8), %s231_s13, 4294966272  ;;  %v937_v0 = vmov 0.0   ;;  %v938_v1 = vmov 0   ;;  %v270_v2 = vld [vmem:[%s234_s15 + $0x38] sm:$0xff]  ;;  %v269_v3 = vld [vmem:[%s234_s15 + $0x30] sm:$0xff]  ;;  %vm299_vm0 = vcmask 261120  }
  0x2d   : > { %376 = vmatprep.mubr.f32.mxu0 %v937_v0  ;;  %807 = vset.pattern.permute.xlu1 %v938_v1  ;;  %v268_v4 = vld [vmem:[%s234_s15 + $0x28] sm:$0xff]  ;;  %v267_v5 = vld [vmem:[%s234_s15 + $0x20] sm:$0xff]  ;;  %v266_v6 = vld [vmem:[%s234_s15 + $0x18] sm:$0xff]  ;;  %s260_s27 = scalar_lea.vmem [#allocation5], %s721_s12  ;;  %s737_s12 = sshll.u32 %s924_s21, 10 }
  0x2e   : > { %806 = vset.pattern.permute.xlu0 %v938_v1  ;;  %577 = vmatprep.mubr.f32.mxu1 %v937_v0  ;;  %v265_v7 = vld [vmem:[%s234_s15 + $0x10] sm:$0xff]  ;;  %v264_v8 = vld [vmem:[%s234_s15 + $0x8] sm:$0xff]  ;;  %v278_v10 = vld [vmem:[%s1223_s2 + $0x18] sm:$0xff]  ;;  %s626_s29 = sshll.u32 %s260_s27, 4  ;;  %s1173_s9 = scalar_lea.hbm %s1226_s5, %s737_s12  ;;  %s1168_s29 = int_to_ptr.vmem [resolvable:$true] %s626_s29 }
  0x2f   : > { %336 = vmatprep.subr.mxu0 %v270_v2  ;;  %v276_v9 = vld [vmem:[%s1223_s2 + $0x8] sm:$0xff]  ;;  %v263_v11 = vld [vmem:[%s234_s15] sm:$0xff]  ;;  %296 = vperm.xlu0 %806, %v278_v10   ;;  %v277_v14 = vld [vmem:[%s1223_s2 + $0x10] sm:$0xff]  ;;  %s611_s13 = scalar_lea.sflag [#allocation4], %s1056_s11  ;;  %s852_s21 = scalar_lea.vmem %s1168_s29, 1024 }
  0x30   : > { %337 = vmatpush1.msra.mxu0 %v269_v3  ;;  %286 = vperm.xlu1 %807, %v276_v9   ;;  %v271_v12 = vld [vmem:[%s1222_s1] sm:$0xff]  ;;  %v272_v15 = vld [vmem:[%s1222_s1 + $0x8] sm:$0xff]  ;;  %v273_v18 = vld [vmem:[%s1222_s1 + $0x10] sm:$0xff]  ;;  %p853_p8 = scmp.ne.s32.totalorder %s1168_s29, %s852_s21  ;;  %s939_s15 = smov [#allocation5]  }
  0x31   : > { %338 = vmatprep.subr.mxu0 %v268_v4  ;;  %v275_v13 = vld [vmem:[%s1223_s2] sm:$0xff]  ;;  %v478_v16 = vld [vmem:[%s1225_s4 + $0x8] sm:$0xff]  ;;  %v480_v19 = vld [vmem:[%s1225_s4 + $0x18] sm:$0xff]  ;;  %s856_s30 = sshll.u32 %s939_s15, 4  ;;  %s857_s30 = int_to_ptr.vmem [resolvable:$false] %s856_s30 }
  0x32   : > { %339 = vmatpush1.msra.mxu0 %v267_v5  ;;  %v477_v17 = vld [vmem:[%s1225_s4] sm:$0xff]  ;;  %v479_v20 = vld [vmem:[%s1225_s4 + $0x10] sm:$0xff]  ;;  %v274_v21 = vld [vmem:[%s1222_s1 + $0x18] sm:$0xff]  ;;  %p854_p12 = pnand %p853_p8, %p1023_p9  ;;  %s858_s14 = scalar_lea.vmem %s857_s30, 2048 }
  0x33   : > { %340 = vmatprep.subr.mxu0 %v266_v6  ;;  %291 = vperm.xlu0 %806, %v277_v14   ;;  %p859_p1 = scmp.lt.s32.totalorder %s1168_s29, %s857_s30  ;;  %p860_p3 = scmp.lt.s32.totalorder %s858_s14, %s852_s21 }
  0x34   : > { %341 = vmatpush1.msra.mxu0 %v265_v7  ;;  %281 = vperm.xlu1 %807, %v275_v13   ;;  %p855_p0 = pneg %p854_p12 }
  0x35   : > { %342 = vmatprep.subr.mxu0 %v264_v8  ;;  %p861_p5 = por %p860_p3, %p859_p1 }
  0x36   : > { %343 = vmatpush1.msra.mxu0 %v263_v11 }
  0x37   : > { %723 = vmatmul.mubr.msk.f32.vlgmr.msra.gmra.mxu0 %vm299_vm0, %v271_v12  ;;  %483 = vperm.xlu0 %806, %v477_v17   ;;  %p862_p6 = pnand %p861_p5, %p855_p0 }
  0x38   : > { %382 = vmatprep.mubr.f32.mxu0 %v937_v0  ;;  %488 = vperm.xlu1 %807, %v478_v16  }
  0x3b   : > { %724 = vmatmul.mubr.msk.f32.gmra.mxu0 %vm299_vm0, %v272_v15  ;;  %493 = vperm.xlu0 %806, %v479_v20  }
  0x3c   : > { %388 = vmatprep.mubr.f32.mxu0 %v937_v0  ;;  %498 = vperm.xlu1 %807, %v480_v19  }
  0x3f   : > { %725 = vmatmul.mubr.msk.f32.gmra.mxu0 %vm299_vm0, %v273_v18 }
  0x40   : > { %394 = vmatprep.mubr.f32.mxu0 %v937_v0 }
  0x43   : > { %726 = vmatmul.mubr.msk.f32.gmra.mxu0 %vm299_vm0, %v274_v21 }
  0xaa   : > { %v297_v25 = vpop.permute.xlu0 %296 }
  0xab   : > { %v287_v22 = vpop.permute.xlu1 %286 }
  0xae   : > { %v292_v36 = vpop.permute.xlu0 %291 }
  0xaf   : > { %v282_v26 = vpop.permute.xlu1 %281 }
  0xf7   : > { %v378_v23 = vpop.f32.mrf.mxu0 }
  0xf8   : > { %v1115_v30 = vadd.f32 %v378_v23, %v282_v26 }
  0xf9   : > { %v380_v24 = vpop.f32.mrf.mxu0 }
  0xfa   : > { %v1111_v28 = vadd.f32 %v380_v24, %v282_v26  ;;  %v409_v38 = vmul.f32 %v1115_v30, %v1115_v30 }
  0xfb   : > { %v384_v27 = vpop.f32.mrf.mxu0 }
  0xfc   : > { %v1113_v29 = vadd.f32 %v384_v27, %v287_v22  ;;  %v410_v35 = vmul.f32 %v1111_v28, %v1111_v28  ;;  %v417_v49 = vmul.f32 %v409_v38, %v1115_v30 }
  0xfd   : > { %v386_v31 = vpop.f32.mrf.mxu0 }
  0xfe   : > { %v1117_v32 = vadd.f32 %v386_v31, %v287_v22  ;;  %v411_v33 = vmul.f32 %v1113_v29, %v1113_v29  ;;  %v418_v46 = vmul.f32 %v410_v35, %v1111_v28  ;;  %v425_v62 = vmul.f32 0.044715, %v417_v49 }
  0xff   : > { %v390_v34 = vpop.f32.mrf.mxu0 }
 0x100   : > { %v412_v37 = vmul.f32 %v1117_v32, %v1117_v32  ;;  %v1127_v39 = vadd.f32 %v390_v34, %v292_v36  ;;  %v419_v42 = vmul.f32 %v411_v33, %v1113_v29  ;;  %v426_v59 = vmul.f32 0.044715, %v418_v46 }
 0x101   : > { %v392_v40 = vpop.f32.mrf.mxu0  ;;  %v433_v10 = vadd.f32 %v425_v62, %v1115_v30  ;;  %v404_v46 = vmul.f32 0.5, %v1117_v32 }
 0x102   : > { %v420_v41 = vmul.f32 %v412_v37, %v1117_v32  ;;  %v413_v43 = vmul.f32 %v1127_v39, %v1127_v39  ;;  %v393_v44 = vadd.f32 %v392_v40, %v292_v36  ;;  %v427_v56 = vmul.f32 0.044715, %v419_v42 }
 0x103   : > { %v396_v45 = vpop.f32.mrf.mxu0  ;;  %v434_v7 = vadd.f32 %v426_v59, %v1111_v28  ;;  %v441_v18 = vmul.f32 0.7978846, %v433_v10  ;;  %v405_v42 = vmul.f32 0.5, %v1127_v39 }
 0x104   : > { %v428_v47 = vmul.f32 0.044715, %v420_v41  ;;  %v397_v48 = vadd.f32 %v396_v45, %v297_v25  ;;  %v421_v50 = vmul.f32 %v413_v43, %v1127_v39  ;;  %v414_v51 = vmul.f32 %v393_v44, %v393_v44 }
 0x105   : > { %v398_v52 = vpop.f32.mrf.mxu0  ;;  %v435_v5 = vadd.f32 %v427_v56, %v1113_v29  ;;  %v442_v16 = vmul.f32 0.7978846, %v434_v7  ;;  %v406_v38 = vmul.f32 0.5, %v393_v44 }
 0x106   : > { %v436_v53 = vadd.f32 %v428_v47, %v1117_v32  ;;  %v415_v54 = vmul.f32 %v397_v48, %v397_v48  ;;  %v399_v55 = vadd.f32 %v398_v52, %v297_v25  ;;  %v429_v57 = vmul.f32 0.044715, %v421_v50  ;;  %v473_v32 = vld [vmem:[%s1224_s3] sm:$0xff] }
 0x107   : > { %v422_v58 = vmul.f32 %v414_v51, %v393_v44  ;;  %v443_v15 = vmul.f32 0.7978846, %v435_v5  ;;  %v407_v34 = vmul.f32 0.5, %v397_v48  ;;  %v403_v50 = vmul.f32 0.5, %v1113_v29  ;;  %v475_v29 = vld [vmem:[%s1224_s3 + $0x10] sm:$0xff] }
 0x108   : > { %v423_v60 = vmul.f32 %v415_v54, %v397_v48  ;;  %v416_v61 = vmul.f32 %v399_v55, %v399_v55  ;;  %v437_v63 = vadd.f32 %v429_v57, %v1127_v39  ;;  %v444_v2 = vmul.f32 0.7978846, %v436_v53 }
 0x109   : > { %v430_v1 = vmul.f32 0.044715, %v422_v58  ;;  %v408_v26 = vmul.f32 0.5, %v399_v55  ;;  %v402_v52 = vmul.f32 0.5, %v1111_v28  ;;  %v401_v53 = vmul.f32 0.5, %v1115_v30  ;;  %v474_v28 = vld [vmem:[%s1224_s3 + $0x8] sm:$0xff] }
 0x10a   : > { %v431_v3 = vmul.f32 0.044715, %v423_v60  ;;  %v424_v4 = vmul.f32 %v416_v61, %v399_v55  ;;  %v445_v11 = vmul.f32 0.7978846, %v437_v63  ;;  %808 = vtanh.f32 %v444_v2  ;;  %v476_v30 = vld [vmem:[%s1224_s3 + $0x18] sm:$0xff]  ;;  %v489_v60 = vpop.permute.xlu1 %488 }
 0x10b   : > { %v438_v6 = vadd.f32 %v430_v1, %v393_v44 }
 0x10c   : > { %v432_v8 = vmul.f32 0.044715, %v424_v4  ;;  %v439_v9 = vadd.f32 %v431_v3, %v397_v48 }
 0x10d   : > { %v446_v12 = vmul.f32 0.7978846, %v438_v6 }
 0x10e   : > { %v440_v13 = vadd.f32 %v432_v8, %v399_v55  ;;  %v447_v14 = vmul.f32 0.7978846, %v439_v9  ;;  %v484_v55 = vpop.permute.xlu0 %483  ;;  %v499_v6 = vpop.permute.xlu1 %498 }
 0x10f   : > { %810 = vtanh.f32 %v446_v12 }
 0x110   : > { %v448_v17 = vmul.f32 0.7978846, %v440_v13  ;;  %812 = vtanh.f32 %v447_v14 }
 0x111   : > { %814 = vtanh.f32 %v445_v11 }
 0x112   : > { %816 = vtanh.f32 %v448_v17  ;;  %v494_v1 = vpop.permute.xlu0 %493 }
 0x113   : > { %818 = vtanh.f32 %v443_v15 }
 0x114   : > { %820 = vtanh.f32 %v442_v16 }
 0x115   : > { %822 = vtanh.f32 %v441_v18 }
 0x117   : > { %v809_v19 = vpop.eup %808 }
 0x118   : > { %v460_v40 = vadd.f32 1.0, %v809_v19 }
 0x11a   : > { %v468_v48 = vmul.f32 %v460_v40, %v404_v46 }
 0x11c   : > { %v811_v20 = vpop.eup %810 }
 0x11d   : > { %v813_v21 = vpop.eup %812  ;;  %v462_v31 = vadd.f32 1.0, %v811_v20 }
 0x11e   : > { %v815_v22 = vpop.eup %814  ;;  %v463_v24 = vadd.f32 1.0, %v813_v21 }
 0x11f   : > { %v817_v23 = vpop.eup %816  ;;  %v461_v35 = vadd.f32 1.0, %v815_v22  ;;  %v470_v45 = vmul.f32 %v462_v31, %v406_v38 }
 0x120   : > { %v819_v25 = vpop.eup %818  ;;  %v464_v27 = vadd.f32 1.0, %v817_v23  ;;  %v471_v41 = vmul.f32 %v463_v24, %v407_v34 }
 0x121   : > { %v821_v33 = vpop.eup %820  ;;  %v459_v43 = vadd.f32 1.0, %v819_v25  ;;  %v469_v49 = vmul.f32 %v461_v35, %v405_v42 }
 0x122   : > { %v823_v36 = vpop.eup %822  ;;  %v472_v37 = vmul.f32 %v464_v27, %v408_v26  ;;  %v458_v47 = vadd.f32 1.0, %v821_v33 }
 0x123   : > { %v457_v51 = vadd.f32 1.0, %v823_v36  ;;  %v467_v44 = vmul.f32 %v459_v43, %v403_v50 }
 0x124   : > { %537 = vmatprep.subr.mxu1 %v472_v37  ;;  %v466_v39 = vmul.f32 %v458_v47, %v402_v52 }
 0x125   : > { %538 = vmatpush1.msra.mxu1 %v471_v41  ;;  %v465_v54 = vmul.f32 %v457_v51, %v401_v53 }
 0x126   : > { %539 = vmatprep.subr.mxu1 %v470_v45 }
 0x127   : > { %540 = vmatpush1.msra.mxu1 %v469_v49 }
 0x128   : > { %541 = vmatprep.subr.mxu1 %v468_v48 }
 0x129   : > { %542 = vmatpush1.msra.mxu1 %v467_v44 }
 0x12a   : > { %543 = vmatprep.subr.mxu1 %v466_v39 }
 0x12b   : > { %544 = vmatpush1.msra.mxu1 %v465_v54 }
 0x12c   : > { %727 = vmatmul.mubr.msk.f32.vlgmr.msra.gmra.mxu1 %vm299_vm0, %v473_v32 }
 0x12d   : > { %583 = vmatprep.mubr.f32.mxu1 %v937_v0 }
 0x130   : > { %728 = vmatmul.mubr.msk.f32.gmra.mxu1 %vm299_vm0, %v474_v28 }
 0x131   : > { %589 = vmatprep.mubr.f32.mxu1 %v937_v0 }
 0x134   : > { %729 = vmatmul.mubr.msk.f32.gmra.mxu1 %vm299_vm0, %v475_v29 }
 0x135   : > { %595 = vmatprep.mubr.f32.mxu1 %v937_v0 }
 0x138   : > { %730 = vmatmul.mubr.msk.f32.gmra.mxu1 %vm299_vm0, %v476_v30 }
 0x1ec   : > { %v579_v56 = vpop.f32.mrf.mxu1 }
 0x1ed   : > { %v580_v57 = vadd.f32 %v579_v56, %v484_v55 }
 0x1ee   : > { %v581_v58 = vpop.f32.mrf.mxu1 }
 0x1ef   : > { %602 = vst [vmem:[%s260_s27] sm:$0xff] %v580_v57  ;;  %v582_v59 = vadd.f32 %v581_v58, %v484_v55 }
 0x1f0   : > { %v585_v61 = vpop.f32.mrf.mxu1 }
 0x1f1   : > { %603 = vst [vmem:[%s260_s27 + $0x8] sm:$0xff] %v582_v59  ;;  %v586_v62 = vadd.f32 %v585_v61, %v489_v60 }
 0x1f2   : > { %v587_v0 = vpop.f32.mrf.mxu1 }
 0x1f3   : > { %604 = vst [vmem:[%s260_s27 + $0x10] sm:$0xff] %v586_v62  ;;  %v588_v63 = vadd.f32 %v587_v0, %v489_v60 }
 0x1f4   : > { %v591_v2 = vpop.f32.mrf.mxu1 }
 0x1f5   : > { %605 = vst [vmem:[%s260_s27 + $0x18] sm:$0xff] %v588_v63  ;;  %v592_v3 = vadd.f32 %v591_v2, %v494_v1 }
 0x1f6   : > { %v593_v4 = vpop.f32.mrf.mxu1 }
 0x1f7   : > { %606 = vst [vmem:[%s260_s27 + $0x20] sm:$0xff] %v592_v3  ;;  %v594_v5 = vadd.f32 %v593_v4, %v494_v1 }
 0x1f8   : > { %v597_v7 = vpop.f32.mrf.mxu1 }
 0x1f9   : > { %607 = vst [vmem:[%s260_s27 + $0x28] sm:$0xff] %v594_v5  ;;  %v598_v8 = vadd.f32 %v597_v7, %v499_v6 }
 0x1fa   : > { %v599_v9 = vpop.f32.mrf.mxu1 }
 0x1fb   : > { %608 = vst [vmem:[%s260_s27 + $0x30] sm:$0xff] %v598_v8  ;;  %v600_v10 = vadd.f32 %v599_v9, %v499_v6 }
 0x1fd   : > { %609 = vst [vmem:[%s260_s27 + $0x38] sm:$0xff] %v600_v10 }
 0x1fe   : > { %865 = shalt.err (!%p862_p6)
}
 0x1ff   : > { %s866_s16 = scalar_lea.hbm %s1173_s9, 1024  ;;  %s870_s25 = scalar_lea.hbm %s1226_s5, 2048 }
 0x200   : > { %p867_p7 = scmp.ne.s32.totalorder %s1173_s9, %s866_s16  ;;  %p871_p13 = scmp.lt.s32.totalorder %s1173_s9, %s1226_s5 }
 0x201   : > { %p872_p2 = scmp.lt.s32.totalorder %s870_s25, %s866_s16 }
 0x202   : > { %p868_p10 = pnand %p867_p7, %p1023_p9 }
 0x203   : > { %p873_p8 = por %p872_p2, %p871_p13 }
 0x204   : > { %p869_p4 = pneg %p868_p10 }
 0x206   : > { %p874_p12 = pnand %p873_p8, %p869_p4 }
 0x208   : > { %877 = shalt.err (!%p874_p12)
}
 0x209   : > { %s940_s10 = smov 256   ;;  %s941_s28 = smov 16  }
 0x20a   : > { %740 = dma.vmem_to_hbm [thread:$0]  (%p1023_p9), %s1168_s29, 1024, %s1173_s9, %s611_s13, %s940_s10, %s940_s10, %s941_s28  }
 0x20b PF: > { %s641_s21 = sand.u32 1, %s912_s18   ;;  %p1232_p0 = scmp.ge.s32.totalorder %s932_s23, 2 }
 0x20c   : > { %s642_s15 = scalar_lea.sflag [#allocation4], %s641_s21 }
 0x20d   : > { %p747_p1 = pnand %p1232_p0, %p1030_p11 }
 0x20f   : > { %p748_p3 = pneg %p747_p1 }
 0x211   : > { %907 = dma.done.wait (%p748_p3), %s642_s15, 1024  }
 0x212   : > { %909 = vsyncadd (%p748_p3), %s642_s15, 4294966272  ;;  %s21_s23 = sadd.s32 1, %s932_s23   ;;  %s1233_s18 = smov %s916_s19 }
 0x213   : > { %p18_p5 = scmp.ge.s32.totalorder %s21_s23, 4   ;;  %s1234_s19 = smov %s920_s20 }
 0x214   : > { %s1235_s20 = smov %s1028_s7  ;;  %s1236_s21 = smov %s928_s22 }
 0x215   : > { %s1237_s22 = smov %s1239_s26  ;;  %20 = sbr.rel (!%p18_p5) target bundleno = 6 (0x6), region = 85 }
 0x21a   :  { %647 = vsyncpa [#allocation3], 1 }
 0x21b   :  { %649 = vsyncpa [#allocation3 + $0x1], 1 }
 0x21c   :  { %650 = vsyncpa [#allocation4], 1 }
 0x21d   :  { %652 = vsyncpa [#allocation4 + $0x1], 1 }

// kernel: tpu_custom_call.1
= control target key start
LH: loop header
LB: loop body
LE: loop exit
PB: predicated region body
PF: predicated region fallthrough
CT: control target
= control target key end

     0   :  { %10 = vsyncpa [#allocation3], 0  ;;  %s1221_s0 = inlined_call_operand.hbm [shape: f32[2,32,256], index: 0, kind: input, shape index: {}]   ;;  %s1222_s1 = inlined_call_operand.vmem [shape: f32[32,32], index: 1, kind: input, shape index: {}]   ;;  %s1223_s2 = inlined_call_operand.vmem [shape: f32[32,1], index: 2, kind: input, shape index: {}]   ;;  %s1224_s3 = inlined_call_operand.vmem [shape: f32[32,32], index: 3, kind: input, shape index: {}]   ;;  %s1225_s4 = inlined_call_operand.vmem [shape: f32[32,1], index: 4, kind: input, shape index: {}]   ;;  %s1226_s5 = inlined_call_operand.hbm [shape: f32[2,32,256], index: 5, kind: output, shape index: {}]  }
   0x1   :  { %12 = vsyncpa [#allocation3 + $0x1], 0 }
   0x2   :  { %13 = vsyncpa [#allocation4], 0 }
   0x3   :  { %15 = vsyncpa [#allocation4 + $0x1], 0  ;;  %s972_s18 = smov 0   ;;  %s974_s19 = smov 0  }
   0x4   :  { %s976_s20 = smov 0   ;;  %s978_s21 = smov 0  }
   0x5   :  { %s980_s22 = smov 0   ;;  %s982_s23 = smov 0  }
   0x6 LB: > { %s713_s24 = sadd.s32 4294967295, %s932_s23   ;;  %s714_s25 = sadd.s32 4294967294, %s932_s23   ;;  %s932_s23 = sphi %s982_s23, %s21_s23   ;;  %s928_s22 = sphi %s980_s22, %s1237_s22   ;;  %s924_s21 = sphi %s978_s21, %s1236_s21   ;;  %s920_s20 = sphi %s976_s20, %s1235_s20   ;;  %s916_s19 = sphi %s974_s19, %s1234_s19   ;;  %s912_s18 = sphi %s972_s18, %s1233_s18  }
   0x7   : > { %s33_s26 = sadd.s32 1, %s928_s22  ;;  %s42_s27 = sadd.s32 1, %s920_s20 }
   0x8   : > { %p35_p0 = scmp.ge.s32.totalorder %s33_s26, 2  ;;  %p49_p1 = scmp.ne.s32.totalorder %s920_s20, %s916_s19 }
   0x9   : > { %p50_p2 = scmp.eq.s32.totalorder %s932_s23, 0  ;;  %p55_p3 = scmp.ne.s32.totalorder %s916_s19, %s912_s18 }
   0xa   : > { %s1239_s26 = smov (%p35_p0, %s33_s26), 0  ;;  %p56_p5 = scmp.eq.s32.totalorder %s713_s24, 0 }
   0xb   : > { %p1013_p4 = por %p50_p2, %p49_p1  ;;  %s37_s29 = ssub.s32 %s928_s22, %s1239_s26 }
   0xc   : > { %p165_p6 = scmp.eq.s32.totalorder %s713_s24, 1  ;;  %p40_p7 = scmp.eq.s32.totalorder %s37_s29, 0 }
   0xd   : > { %p1019_p8 = por %p56_p5, %p55_p3  ;;  %p171_p10 = scmp.eq.s32.totalorder %s714_s25, 1 }
   0xe   : > { %p1023_p9 = por %p165_p6, %p49_p1  ;;  %p750_p13 = scmp.lt.s32.totalorder %s932_s23, 2 }
   0xf   : > { %s1028_s7 = scalar_select %p40_p7, %s920_s20, %s42_s27  }
  0x10   : > { %p1030_p11 = por %p171_p10, %p55_p3  ;;  %s203_s9 = sand.u32 1, %s920_s20  }
  0x11   : > { %s717_s10 = sshll.u32 %s203_s9, 6  ;;  %s736_s11 = sshll.u32 %s928_s22, 10 }
  0x12   : > { %s215_s14 = scalar_lea.hbm %s1221_s0, %s736_s11  ;;  %s207_s15 = scalar_lea.vmem [#allocation2], %s717_s10 }
  0x13   : > { %s216_s16 = sshll.u32 %s207_s15, 4  ;;  %p1043_p0 = pnand %p750_p13, %p1013_p4  ;;  %s217_s16 = int_to_ptr.vmem [resolvable:$true] %s216_s16 }
  0x14   : > { %p720_p1 = scmp.ge.s32.totalorder %s932_s23, 1  ;;  %s204_s24 = scalar_lea.sflag [#allocation3], %s203_s9 }
  0x15   : > { %p826_p2 = pneg %p1043_p0  ;;  %s837_s25 = scalar_lea.vmem %s217_s16, 1024 }
  0x16   : > { %p838_p3 = scmp.ne.s32.totalorder %s217_s16, %s837_s25  ;;  %s934_s27 = smov [#allocation2]  }
  0x17   : > { %s842_s29 = sshll.u32 %s934_s27, 4  ;;  %s843_s29 = int_to_ptr.vmem [resolvable:$false] %s842_s29 }
  0x18   : > { %p840_p5 = pnand %p838_p3, %p826_p2  ;;  %s844_s10 = scalar_lea.vmem %s843_s29, 2048 }
  0x19   : > { %p845_p7 = scmp.lt.s32.totalorder %s217_s16, %s843_s29  ;;  %p846_p10 = scmp.lt.s32.totalorder %s844_s10, %s837_s25 }
  0x1a   : > { %p841_p6 = pneg %p840_p5 }
  0x1b   : > { %p847_p12 = por %p846_p10, %p845_p7 }
  0x1d   : > { %p848_p4 = pnand %p847_p12, %p841_p6 }
  0x1f   : > { %851 = shalt.err (!%p848_p4)
}
  0x20   : > { %s935_s28 = smov 256   ;;  %s936_s9 = smov 16  }
  0x21   : > { %745 = dma.hbm_to_vmem [thread:$0]  (!%p1043_p0), %s215_s14, 1024, %s217_s16, %s204_s24, %s935_s28, %s935_s28, %s936_s9  }
  0x22   : > { %p224_p13 = scmp.lt.s32.totalorder %s932_s23, 3 }
  0x24   : > { %p225_p2 = pnand %p720_p1, %p224_p13 }
  0x25   : > { %s1056_s11 = sand.u32 (!%p225_p2), 1, %s916_s19  }
  0x26   : > { %228 = sbr.rel (%p225_p2) target bundleno = 523 (0x20b), region = 40  ;;  %s721_s12 = sshll.u32 (!%p225_p2), %s1056_s11, 6 }
  0x27   : > { %s231_s13 = scalar_lea.sflag (!%p225_p2), [#allocation3], %s1056_s11  ;;  %s234_s15 = scalar_lea.vmem (!%p225_p2), [#allocation2], %s721_s12 }
  0x2b   : > { %903 = dma.done.wait (%p1019_p8), %s231_s13, 1024  }
  0x2c   : > { %905 = vsyncadd (%p1019_p8), %s231_s13, 4294966272  ;;  %v937_v0 = vmov 0.0   ;;  %v938_v1 = vmov 0   ;;  %v270_v2 = vld [vmem:[%s234_s15 + $0x38] sm:$0xff]  ;;  %v269_v3 = vld [vmem:[%s234_s15 + $0x30] sm:$0xff]  ;;  %vm299_vm0 = vcmask 261120  }
  0x2d   : > { %376 = vmatprep.mubr.f32.mxu0 %v937_v0  ;;  %807 = vset.pattern.permute.xlu1 %v938_v1  ;;  %v268_v4 = vld [vmem:[%s234_s15 + $0x28] sm:$0xff]  ;;  %v267_v5 = vld [vmem:[%s234_s15 + $0x20] sm:$0xff]  ;;  %v266_v6 = vld [vmem:[%s234_s15 + $0x18] sm:$0xff]  ;;  %s260_s27 = scalar_lea.vmem [#allocation5], %s721_s12  ;;  %s737_s12 = sshll.u32 %s924_s21, 10 }
  0x2e   : > { %806 = vset.pattern.permute.xlu0 %v938_v1  ;;  %577 = vmatprep.mubr.f32.mxu1 %v937_v0  ;;  %v265_v7 = vld [vmem:[%s234_s15 + $0x10] sm:$0xff]  ;;  %v264_v8 = vld [vmem:[%s234_s15 + $0x8] sm:$0xff]  ;;  %v278_v10 = vld [vmem:[%s1223_s2 + $0x18] sm:$0xff]  ;;  %s626_s29 = sshll.u32 %s260_s27, 4  ;;  %s1173_s9 = scalar_lea.hbm %s1226_s5, %s737_s12  ;;  %s1168_s29 = int_to_ptr.vmem [resolvable:$true] %s626_s29 }
  0x2f   : > { %336 = vmatprep.subr.mxu0 %v270_v2  ;;  %v276_v9 = vld [vmem:[%s1223_s2 + $0x8] sm:$0xff]  ;;  %v263_v11 = vld [vmem:[%s234_s15] sm:$0xff]  ;;  %296 = vperm.xlu0 %806, %v278_v10   ;;  %v277_v14 = vld [vmem:[%s1223_s2 + $0x10] sm:$0xff]  ;;  %s611_s13 = scalar_lea.sflag [#allocation4], %s1056_s11  ;;  %s852_s21 = scalar_lea.vmem %s1168_s29, 1024 }
  0x30   : > { %337 = vmatpush1.msra.mxu0 %v269_v3  ;;  %286 = vperm.xlu1 %807, %v276_v9   ;;  %v271_v12 = vld [vmem:[%s1222_s1] sm:$0xff]  ;;  %v272_v15 = vld [vmem:[%s1222_s1 + $0x8] sm:$0xff]  ;;  %v273_v18 = vld [vmem:[%s1222_s1 + $0x10] sm:$0xff]  ;;  %p853_p8 = scmp.ne.s32.totalorder %s1168_s29, %s852_s21  ;;  %s939_s15 = smov [#allocation5]  }
  0x31   : > { %338 = vmatprep.subr.mxu0 %v268_v4  ;;  %v275_v13 = vld [vmem:[%s1223_s2] sm:$0xff]  ;;  %v478_v16 = vld [vmem:[%s1225_s4 + $0x8] sm:$0xff]  ;;  %v480_v19 = vld [vmem:[%s1225_s4 + $0x18] sm:$0xff]  ;;  %s856_s30 = sshll.u32 %s939_s15, 4  ;;  %s857_s30 = int_to_ptr.vmem [resolvable:$false] %s856_s30 }
  0x32   : > { %339 = vmatpush1.msra.mxu0 %v267_v5  ;;  %v477_v17 = vld [vmem:[%s1225_s4] sm:$0xff]  ;;  %v479_v20 = vld [vmem:[%s1225_s4 + $0x10] sm:$0xff]  ;;  %v274_v21 = vld [vmem:[%s1222_s1 + $0x18] sm:$0xff]  ;;  %p854_p12 = pnand %p853_p8, %p1023_p9  ;;  %s858_s14 = scalar_lea.vmem %s857_s30, 2048 }
  0x33   : > { %340 = vmatprep.subr.mxu0 %v266_v6  ;;  %291 = vperm.xlu0 %806, %v277_v14   ;;  %p859_p1 = scmp.lt.s32.totalorder %s1168_s29, %s857_s30  ;;  %p860_p3 = scmp.lt.s32.totalorder %s858_s14, %s852_s21 }
  0x34   : > { %341 = vmatpush1.msra.mxu0 %v265_v7  ;;  %281 = vperm.xlu1 %807, %v275_v13   ;;  %p855_p0 = pneg %p854_p12 }
  0x35   : > { %342 = vmatprep.subr.mxu0 %v264_v8  ;;  %p861_p5 = por %p860_p3, %p859_p1 }
  0x36   : > { %343 = vmatpush1.msra.mxu0 %v263_v11 }
  0x37   : > { %723 = vmatmul.mubr.msk.f32.vlgmr.msra.gmra.mxu0 %vm299_vm0, %v271_v12  ;;  %483 = vperm.xlu0 %806, %v477_v17   ;;  %p862_p6 = pnand %p861_p5, %p855_p0 }
  0x38   : > { %382 = vmatprep.mubr.f32.mxu0 %v937_v0  ;;  %488 = vperm.xlu1 %807, %v478_v16  }
  0x3b   : > { %724 = vmatmul.mubr.msk.f32.gmra.mxu0 %vm299_vm0, %v272_v15  ;;  %493 = vperm.xlu0 %806, %v479_v20  }
  0x3c   : > { %388 = vmatprep.mubr.f32.mxu0 %v937_v0  ;;  %498 = vperm.xlu1 %807, %v480_v19  }
  0x3f   : > { %725 = vmatmul.mubr.msk.f32.gmra.mxu0 %vm299_vm0, %v273_v18 }
  0x40   : > { %394 = vmatprep.mubr.f32.mxu0 %v937_v0 }
  0x43   : > { %726 = vmatmul.mubr.msk.f32.gmra.mxu0 %vm299_vm0, %v274_v21 }
  0xaa   : > { %v297_v25 = vpop.permute.xlu0 %296 }
  0xab   : > { %v287_v22 = vpop.permute.xlu1 %286 }
  0xae   : > { %v292_v36 = vpop.permute.xlu0 %291 }
  0xaf   : > { %v282_v26 = vpop.permute.xlu1 %281 }
  0xf7   : > { %v378_v23 = vpop.f32.mrf.mxu0 }
  0xf8   : > { %v1115_v30 = vadd.f32 %v378_v23, %v282_v26 }
  0xf9   : > { %v380_v24 = vpop.f32.mrf.mxu0 }
  0xfa   : > { %v1111_v28 = vadd.f32 %v380_v24, %v282_v26  ;;  %v409_v38 = vmul.f32 %v1115_v30, %v1115_v30 }
  0xfb   : > { %v384_v27 = vpop.f32.mrf.mxu0 }
  0xfc   : > { %v1113_v29 = vadd.f32 %v384_v27, %v287_v22  ;;  %v410_v35 = vmul.f32 %v1111_v28, %v1111_v28  ;;  %v417_v49 = vmul.f32 %v409_v38, %v1115_v30 }
  0xfd   : > { %v386_v31 = vpop.f32.mrf.mxu0 }
  0xfe   : > { %v1117_v32 = vadd.f32 %v386_v31, %v287_v22  ;;  %v411_v33 = vmul.f32 %v1113_v29, %v1113_v29  ;;  %v418_v46 = vmul.f32 %v410_v35, %v1111_v28  ;;  %v425_v62 = vmul.f32 0.044715, %v417_v49 }
  0xff   : > { %v390_v34 = vpop.f32.mrf.mxu0 }
 0x100   : > { %v412_v37 = vmul.f32 %v1117_v32, %v1117_v32  ;;  %v1127_v39 = vadd.f32 %v390_v34, %v292_v36  ;;  %v419_v42 = vmul.f32 %v411_v33, %v1113_v29  ;;  %v426_v59 = vmul.f32 0.044715, %v418_v46 }
 0x101   : > { %v392_v40 = vpop.f32.mrf.mxu0  ;;  %v433_v10 = vadd.f32 %v425_v62, %v1115_v30  ;;  %v404_v46 = vmul.f32 0.5, %v1117_v32 }
 0x102   : > { %v420_v41 = vmul.f32 %v412_v37, %v1117_v32  ;;  %v413_v43 = vmul.f32 %v1127_v39, %v1127_v39  ;;  %v393_v44 = vadd.f32 %v392_v40, %v292_v36  ;;  %v427_v56 = vmul.f32 0.044715, %v419_v42 }
 0x103   : > { %v396_v45 = vpop.f32.mrf.mxu0  ;;  %v434_v7 = vadd.f32 %v426_v59, %v1111_v28  ;;  %v441_v18 = vmul.f32 0.7978846, %v433_v10  ;;  %v405_v42 = vmul.f32 0.5, %v1127_v39 }
 0x104   : > { %v428_v47 = vmul.f32 0.044715, %v420_v41  ;;  %v397_v48 = vadd.f32 %v396_v45, %v297_v25  ;;  %v421_v50 = vmul.f32 %v413_v43, %v1127_v39  ;;  %v414_v51 = vmul.f32 %v393_v44, %v393_v44 }
 0x105   : > { %v398_v52 = vpop.f32.mrf.mxu0  ;;  %v435_v5 = vadd.f32 %v427_v56, %v1113_v29  ;;  %v442_v16 = vmul.f32 0.7978846, %v434_v7  ;;  %v406_v38 = vmul.f32 0.5, %v393_v44 }
 0x106   : > { %v436_v53 = vadd.f32 %v428_v47, %v1117_v32  ;;  %v415_v54 = vmul.f32 %v397_v48, %v397_v48  ;;  %v399_v55 = vadd.f32 %v398_v52, %v297_v25  ;;  %v429_v57 = vmul.f32 0.044715, %v421_v50  ;;  %v473_v32 = vld [vmem:[%s1224_s3] sm:$0xff] }
 0x107   : > { %v422_v58 = vmul.f32 %v414_v51, %v393_v44  ;;  %v443_v15 = vmul.f32 0.7978846, %v435_v5  ;;  %v407_v34 = vmul.f32 0.5, %v397_v48  ;;  %v403_v50 = vmul.f32 0.5, %v1113_v29  ;;  %v475_v29 = vld [vmem:[%s1224_s3 + $0x10] sm:$0xff] }
 0x108   : > { %v423_v60 = vmul.f32 %v415_v54, %v397_v48  ;;  %v416_v61 = vmul.f32 %v399_v55, %v399_v55  ;;  %v437_v63 = vadd.f32 %v429_v57, %v1127_v39  ;;  %v444_v2 = vmul.f32 0.7978846, %v436_v53 }
 0x109   : > { %v430_v1 = vmul.f32 0.044715, %v422_v58  ;;  %v408_v26 = vmul.f32 0.5, %v399_v55  ;;  %v402_v52 = vmul.f32 0.5, %v1111_v28  ;;  %v401_v53 = vmul.f32 0.5, %v1115_v30  ;;  %v474_v28 = vld [vmem:[%s1224_s3 + $0x8] sm:$0xff] }
 0x10a   : > { %v431_v3 = vmul.f32 0.044715, %v423_v60  ;;  %v424_v4 = vmul.f32 %v416_v61, %v399_v55  ;;  %v445_v11 = vmul.f32 0.7978846, %v437_v63  ;;  %808 = vtanh.f32 %v444_v2  ;;  %v476_v30 = vld [vmem:[%s1224_s3 + $0x18] sm:$0xff]  ;;  %v489_v60 = vpop.permute.xlu1 %488 }
 0x10b   : > { %v438_v6 = vadd.f32 %v430_v1, %v393_v44 }
 0x10c   : > { %v432_v8 = vmul.f32 0.044715, %v424_v4  ;;  %v439_v9 = vadd.f32 %v431_v3, %v397_v48 }
 0x10d   : > { %v446_v12 = vmul.f32 0.7978846, %v438_v6 }
 0x10e   : > { %v440_v13 = vadd.f32 %v432_v8, %v399_v55  ;;  %v447_v14 = vmul.f32 0.7978846, %v439_v9  ;;  %v484_v55 = vpop.permute.xlu0 %483  ;;  %v499_v6 = vpop.permute.xlu1 %498 }
 0x10f   : > { %810 = vtanh.f32 %v446_v12 }
 0x110   : > { %v448_v17 = vmul.f32 0.7978846, %v440_v13  ;;  %812 = vtanh.f32 %v447_v14 }
 0x111   : > { %814 = vtanh.f32 %v445_v11 }
 0x112   : > { %816 = vtanh.f32 %v448_v17  ;;  %v494_v1 = vpop.permute.xlu0 %493 }
 0x113   : > { %818 = vtanh.f32 %v443_v15 }
 0x114   : > { %820 = vtanh.f32 %v442_v16 }
 0x115   : > { %822 = vtanh.f32 %v441_v18 }
 0x117   : > { %v809_v19 = vpop.eup %808 }
 0x118   : > { %v460_v40 = vadd.f32 1.0, %v809_v19 }
 0x11a   : > { %v468_v48 = vmul.f32 %v460_v40, %v404_v46 }
 0x11c   : > { %v811_v20 = vpop.eup %810 }
 0x11d   : > { %v813_v21 = vpop.eup %812  ;;  %v462_v31 = vadd.f32 1.0, %v811_v20 }
 0x11e   : > { %v815_v22 = vpop.eup %814  ;;  %v463_v24 = vadd.f32 1.0, %v813_v21 }
 0x11f   : > { %v817_v23 = vpop.eup %816  ;;  %v461_v35 = vadd.f32 1.0, %v815_v22  ;;  %v470_v45 = vmul.f32 %v462_v31, %v406_v38 }
 0x120   : > { %v819_v25 = vpop.eup %818  ;;  %v464_v27 = vadd.f32 1.0, %v817_v23  ;;  %v471_v41 = vmul.f32 %v463_v24, %v407_v34 }
 0x121   : > { %v821_v33 = vpop.eup %820  ;;  %v459_v43 = vadd.f32 1.0, %v819_v25  ;;  %v469_v49 = vmul.f32 %v461_v35, %v405_v42 }
 0x122   : > { %v823_v36 = vpop.eup %822  ;;  %v472_v37 = vmul.f32 %v464_v27, %v408_v26  ;;  %v458_v47 = vadd.f32 1.0, %v821_v33 }
 0x123   : > { %v457_v51 = vadd.f32 1.0, %v823_v36  ;;  %v467_v44 = vmul.f32 %v459_v43, %v403_v50 }
 0x124   : > { %537 = vmatprep.subr.mxu1 %v472_v37  ;;  %v466_v39 = vmul.f32 %v458_v47, %v402_v52 }
 0x125   : > { %538 = vmatpush1.msra.mxu1 %v471_v41  ;;  %v465_v54 = vmul.f32 %v457_v51, %v401_v53 }
 0x126   : > { %539 = vmatprep.subr.mxu1 %v470_v45 }
 0x127   : > { %540 = vmatpush1.msra.mxu1 %v469_v49 }
 0x128   : > { %541 = vmatprep.subr.mxu1 %v468_v48 }
 0x129   : > { %542 = vmatpush1.msra.mxu1 %v467_v44 }
 0x12a   : > { %543 = vmatprep.subr.mxu1 %v466_v39 }
 0x12b   : > { %544 = vmatpush1.msra.mxu1 %v465_v54 }
 0x12c   : > { %727 = vmatmul.mubr.msk.f32.vlgmr.msra.gmra.mxu1 %vm299_vm0, %v473_v32 }
 0x12d   : > { %583 = vmatprep.mubr.f32.mxu1 %v937_v0 }
 0x130   : > { %728 = vmatmul.mubr.msk.f32.gmra.mxu1 %vm299_vm0, %v474_v28 }
 0x131   : > { %589 = vmatprep.mubr.f32.mxu1 %v937_v0 }
 0x134   : > { %729 = vmatmul.mubr.msk.f32.gmra.mxu1 %vm299_vm0, %v475_v29 }
 0x135   : > { %595 = vmatprep.mubr.f32.mxu1 %v937_v0 }
 0x138   : > { %730 = vmatmul.mubr.msk.f32.gmra.mxu1 %vm299_vm0, %v476_v30 }
 0x1ec   : > { %v579_v56 = vpop.f32.mrf.mxu1 }
 0x1ed   : > { %v580_v57 = vadd.f32 %v579_v56, %v484_v55 }
 0x1ee   : > { %v581_v58 = vpop.f32.mrf.mxu1 }
 0x1ef   : > { %602 = vst [vmem:[%s260_s27] sm:$0xff] %v580_v57  ;;  %v582_v59 = vadd.f32 %v581_v58, %v484_v55 }
 0x1f0   : > { %v585_v61 = vpop.f32.mrf.mxu1 }
 0x1f1   : > { %603 = vst [vmem:[%s260_s27 + $0x8] sm:$0xff] %v582_v59  ;;  %v586_v62 = vadd.f32 %v585_v61, %v489_v60 }
 0x1f2   : > { %v587_v0 = vpop.f32.mrf.mxu1 }
 0x1f3   : > { %604 = vst [vmem:[%s260_s27 + $0x10] sm:$0xff] %v586_v62  ;;  %v588_v63 = vadd.f32 %v587_v0, %v489_v60 }
 0x1f4   : > { %v591_v2 = vpop.f32.mrf.mxu1 }
 0x1f5   : > { %605 = vst [vmem:[%s260_s27 + $0x18] sm:$0xff] %v588_v63  ;;  %v592_v3 = vadd.f32 %v591_v2, %v494_v1 }
 0x1f6   : > { %v593_v4 = vpop.f32.mrf.mxu1 }
 0x1f7   : > { %606 = vst [vmem:[%s260_s27 + $0x20] sm:$0xff] %v592_v3  ;;  %v594_v5 = vadd.f32 %v593_v4, %v494_v1 }
 0x1f8   : > { %v597_v7 = vpop.f32.mrf.mxu1 }
 0x1f9   : > { %607 = vst [vmem:[%s260_s27 + $0x28] sm:$0xff] %v594_v5  ;;  %v598_v8 = vadd.f32 %v597_v7, %v499_v6 }
 0x1fa   : > { %v599_v9 = vpop.f32.mrf.mxu1 }
 0x1fb   : > { %608 = vst [vmem:[%s260_s27 + $0x30] sm:$0xff] %v598_v8  ;;  %v600_v10 = vadd.f32 %v599_v9, %v499_v6 }
 0x1fd   : > { %609 = vst [vmem:[%s260_s27 + $0x38] sm:$0xff] %v600_v10 }
 0x1fe   : > { %865 = shalt.err (!%p862_p6)
}
 0x1ff   : > { %s866_s16 = scalar_lea.hbm %s1173_s9, 1024  ;;  %s870_s25 = scalar_lea.hbm %s1226_s5, 2048 }
 0x200   : > { %p867_p7 = scmp.ne.s32.totalorder %s1173_s9, %s866_s16  ;;  %p871_p13 = scmp.lt.s32.totalorder %s1173_s9, %s1226_s5 }
 0x201   : > { %p872_p2 = scmp.lt.s32.totalorder %s870_s25, %s866_s16 }
 0x202   : > { %p868_p10 = pnand %p867_p7, %p1023_p9 }
 0x203   : > { %p873_p8 = por %p872_p2, %p871_p13 }
 0x204   : > { %p869_p4 = pneg %p868_p10 }
 0x206   : > { %p874_p12 = pnand %p873_p8, %p869_p4 }
 0x208   : > { %877 = shalt.err (!%p874_p12)
}
 0x209   : > { %s940_s10 = smov 256   ;;  %s941_s28 = smov 16  }
 0x20a   : > { %740 = dma.vmem_to_hbm [thread:$0]  (%p1023_p9), %s1168_s29, 1024, %s1173_s9, %s611_s13, %s940_s10, %s940_s10, %s941_s28  }
 0x20b PF: > { %s641_s21 = sand.u32 1, %s912_s18   ;;  %p1232_p0 = scmp.ge.s32.totalorder %s932_s23, 2 }
 0x20c   : > { %s642_s15 = scalar_lea.sflag [#allocation4], %s641_s21 }
 0x20d   : > { %p747_p1 = pnand %p1232_p0, %p1030_p11 }
 0x20f   : > { %p748_p3 = pneg %p747_p1 }
 0x211   : > { %907 = dma.done.wait (%p748_p3), %s642_s15, 1024  }
 0x212   : > { %909 = vsyncadd (%p748_p3), %s642_s15, 4294966272  ;;  %s21_s23 = sadd.s32 1, %s932_s23   ;;  %s1233_s18 = smov %s916_s19 }
 0x213   : > { %p18_p5 = scmp.ge.s32.totalorder %s21_s23, 4   ;;  %s1234_s19 = smov %s920_s20 }
 0x214   : > { %s1235_s20 = smov %s1028_s7  ;;  %s1236_s21 = smov %s928_s22 }
 0x215   : > { %s1237_s22 = smov %s1239_s26  ;;  %20 = sbr.rel (!%p18_p5) target bundleno = 6 (0x6), region = 85 }
 0x21a   :  { %647 = vsyncpa [#allocation3], 1 }
 0x21b   :  { %649 = vsyncpa [#allocation3 + $0x1], 1 }
 0x21c   :  { %650 = vsyncpa [#allocation4], 1 }
 0x21d   :  { %652 = vsyncpa [#allocation4 + $0x1], 1 }

</bundles_post_ra>
